<compile_context>
chip_gen: v5e
topology: v5e:2x2
jax: 0.10.0
libtpu: 0.0.40
codegen_flags: <defaults>
</compile_context>

<pallas_src>
import numpy as np
import jax
import jax.numpy as jnp
from jax.experimental import pallas as pl
from jax.experimental.pallas import tpu as pltpu

# Problem configuration (small, consistent with the module's forward).
B, C_IN, H, W = 2, 4, 16, 16
C_OUT = 8
K = 4          # kernel_size (square)
S = 2          # stride

PAD_L = (K - S) // 2 + (K - S) % 2      # 1  (F.pad "same" split: left/top)
PAD_R = (K - S) // 2                    # 1  (right/bottom)
HP = H + PAD_L + PAD_R                  # 18 height-padded rows (width pad folded into G)
HOUT, WOUT = H * S, W * S               # 32, 32 output spatial
HQ = HOUT // S                          # 16 output-row groups (== H)
NTAP = K // S                           # 2 height taps per height phase

K_DATA = NTAP * C_IN * W                # 128 data columns of the fused LHS
K_TOT = K_DATA + 8                      # +1 bias column, +7 zero cols (8-aligned)
N_TOT = C_OUT * WOUT                    # 256 output columns (lane-dense: 2 full tiles)


def _kernel(lhs_ref, g_ref, o_ref):
    """One height phase per grid step: a single dense matmul, lane-dense store.

    lhs_ref: (1, B*HQ, K_TOT)  f32  tap-fused, bias-augmented LHS for this phase
    g_ref  : (1, K_TOT, N_TOT) f32  folded weights (+ bias row) for this phase
    o_ref  : (1, B*HQ, N_TOT)  f32  all output channels/columns of this phase
    """
    o_ref[0] = jnp.dot(lhs_ref[0], g_ref[0], preferred_element_type=jnp.float32)


def prepare_params(weight, bias):
    """Fold flip/transpose, stride-2 width upsampling, width taps, width
    "same"-pad and the bias of the ConvTranspose2d into one (K_TOT, N_TOT)
    matrix per height phase.  Weights are static per module -> runs once.

    # TODO(synk): if this module is scaled up (larger W / channel counts), G
    # grows as (Cin*W) x (Cout*S*W); add an N-tiling grid axis before G plus
    # its pipeline buffer approach the VMEM budget (v7x: 64 MiB).
    """
    # Effective VALID-conv weight: w_eff[kh, kw, ci, co] = W[ci, co, K-1-kh, K-1-kw]
    w_eff = jnp.flip(jnp.transpose(weight, (2, 3, 0, 1)), axis=(0, 1))   # (K,K,Cin,Cout)

    # band[kw, iw, ow] == 1 iff raw input column iw (padded column iw+PAD_L)
    # feeds output column ow through width tap kw: 2*(iw+PAD_L) - ow == kw.
    # Padded width columns are all-zero, so dropping them folds the width pad
    # away entirely (no width-pad copy anywhere).
    iw_idx = np.arange(W)[:, None]
    ow_idx = np.arange(WOUT)[None, :]
    band = np.stack([(2 * (iw_idx + PAD_L) - ow_idx) == kw for kw in range(K)], axis=0)
    band = jnp.asarray(band.astype(np.float32))                          # (K, W, WOUT)

    bias_row = jnp.repeat(bias.astype(jnp.float32), WOUT)[None, :]       # (1, N_TOT)
    zero_rows = jnp.zeros((K_TOT - K_DATA - 1, N_TOT), jnp.float32)

    g_phases = []
    for rh in range(S):
        taps = []
        for th in range(NTAP):
            kh = rh + S * th                                             # height tap
            g = jnp.einsum('kio,kjw->ijow', w_eff[kh], band)             # (Cin,W,Cout,WOUT)
            taps.append(g.reshape(C_IN * W, N_TOT))                      # row = ci*W + iw
        g_phases.append(jnp.concatenate(taps + [bias_row, zero_rows], axis=0))
    return jnp.stack(g_phases, axis=0)                                   # (S, K_TOT, N_TOT)


def same_pad_conv_transpose_2d(x, g_mat):
    """x: (B, Cin, H, W) NCHW f32; returns (B, Cout, H*S, W*S) NCHW f32."""
    b = x.shape[0]
    m = b * HQ

    # ---- tiny layout plumbing, handled by XLA outside the kernel ------------
    # NCHW -> (B, H, Cin*W), then height "same"-pad (width pad folded into G).
    xr = jnp.transpose(x, (0, 2, 1, 3)).reshape(b, H, C_IN * W)
    xp = jnp.pad(xr, ((0, 0), (PAD_L, PAD_R), (0, 0)))                   # (B, HP, Cin*W)
    # Output row oh = S*qh + rh reads padded rows qh+rh+th (th < NTAP):
    # fuse both taps along K and fold the batch into M.
    lhs = jnp.stack(
        [jnp.concatenate(
            [xp[:, rh + th:rh + th + HQ, :] for th in range(NTAP)],
            axis=-1).reshape(m, K_DATA)
         for rh in range(S)], axis=0)                                    # (S, M, 128)
    ones = jnp.ones((S, m, 1), lhs.dtype)                                # bias column
    zpad = jnp.zeros((S, m, K_TOT - K_DATA - 1), lhs.dtype)
    lhs = jnp.concatenate([lhs, ones, zpad], axis=-1)                    # (S, M, K_TOT)

    out = pl.pallas_call(
        _kernel,
        out_shape=jax.ShapeDtypeStruct((S, m, N_TOT), jnp.float32),
        grid=(S,),
        in_specs=[
            pl.BlockSpec((1, m, K_TOT), lambda rh: (rh, 0, 0)),
            pl.BlockSpec((1, K_TOT, N_TOT), lambda rh: (rh, 0, 0)),
        ],
        out_specs=pl.BlockSpec((1, m, N_TOT), lambda rh: (rh, 0, 0)),
        compiler_params=pltpu.CompilerParams(
            dimension_semantics=("parallel",)),
    )(lhs, g_mat)

    # (rh, b*HQ+qh, co*WOUT+ow) -> (b, co, S*qh+rh, ow): 256 KiB rearrangement
    # done once in the wrapper so the kernel's stores stay lane-dense.
    # NOTE: switch the out_shape dtype to bf16 if the consumer accepts it.
    y = out.reshape(S, b, HQ, C_OUT, WOUT)
    y = jnp.transpose(y, (1, 3, 2, 0, 4)).reshape(b, C_OUT, HOUT, WOUT)
    return y


def _torch_semantics_reference(x, weight, bias, k, s):
    """Definitional ConvTranspose2d (scatter form) on the pre-padded input,
    with padding=k-1 trimming, in numpy.  Independent of the kernel's
    polyphase / width-folding derivation."""
    p = k - s
    padl, padr = p // 2 + p % 2, p // 2
    x_pad = np.pad(x, ((0, 0), (0, 0), (padl, padr), (padl, padr)))
    b_, cin, hp, wp = x_pad.shape
    cout = weight.shape[1]
    hf = (hp - 1) * s + k
    wf = (wp - 1) * s + k
    y_full = np.zeros((b_, cout, hf, wf), np.float64)
    for kh in range(k):
        for kw in range(k):
            contrib = np.einsum('ncij,co->noij', x_pad, weight[:, :, kh, kw])
            y_full[:, :, kh:kh + (hp - 1) * s + 1:s,
                   kw:kw + (wp - 1) * s + 1:s] += contrib
    pt = k - 1
    y = y_full[:, :, pt:hf - pt, pt:wf - pt] + bias[None, :, None, None]
    return y.astype(np.float32)


if __name__ == "__main__":
    key = jax.random.PRNGKey(0)
    kx, kw_, kb = jax.random.split(key, 3)

    x = jax.random.normal(kx, (B, C_IN, H, W), dtype=jnp.float32)
    # Deterministic parameter init (PyTorch ConvTranspose2d weight layout
    # (in_channels, out_channels, kH, kW)); scale ~ 1/sqrt(fan).
    bound = 1.0 / np.sqrt(C_IN * K * K)
    weight = jax.random.uniform(kw_, (C_IN, C_OUT, K, K), jnp.float32,
                                minval=-bound, maxval=bound)
    bias = jax.random.uniform(kb, (C_OUT,), jnp.float32,
                              minval=-bound, maxval=bound)

    # Weight folding done once per module (static parameters).
    g_mat = prepare_params(weight, bias)

    fwd = jax.jit(same_pad_conv_transpose_2d)
    out = jax.block_until_ready(fwd(x, g_mat))

    ref = _torch_semantics_reference(np.asarray(x), np.asarray(weight),
                                     np.asarray(bias), K, S)
    assert out.shape == (B, C_OUT, H * S, W * S), out.shape
    np.testing.assert_allclose(np.asarray(out), ref, rtol=2e-2, atol=1e-2)

    print("KERNEL_OK")
</pallas_src>

<mosaic_0001>
module attributes {stable_mosaic.version = 11 : i64} {
  func.func @_kernel(%arg0: i32, %arg1: memref<1x32x136xf32, #tpu.memory_space<vmem>>, %arg2: memref<1x136x256xf32, #tpu.memory_space<vmem>>, %arg3: memref<1x32x256xf32, #tpu.memory_space<vmem>>) attributes {dimension_semantics = [#tpu.dimension_semantics<parallel>], iteration_bounds = array<i64: 2>, scalar_prefetch = 0 : i64, scratch_operands = 0 : i64, tpu.core_type = #tpu.core_type<tc>, window_params = [{transform_indices = @transform_0, window_bounds = array<i64: 1, 32, 136>}, {transform_indices = @transform_1, window_bounds = array<i64: 1, 136, 256>}, {transform_indices = @transform_2, window_bounds = array<i64: 1, 32, 256>}]} {
    %c0 = arith.constant 0 : index
    %c0_0 = arith.constant 0 : index
    %c0_1 = arith.constant 0 : index
    %0 = vector.load %arg1[%c0, %c0_0, %c0_1] : memref<1x32x136xf32, #tpu.memory_space<vmem>>, vector<1x32x136xf32>
    %1 = vector.shape_cast %0 : vector<1x32x136xf32> to vector<32x136xf32>
    %c0_2 = arith.constant 0 : index
    %c0_3 = arith.constant 0 : index
    %c0_4 = arith.constant 0 : index
    %2 = vector.load %arg2[%c0_2, %c0_3, %c0_4] : memref<1x136x256xf32, #tpu.memory_space<vmem>>, vector<1x136x256xf32>
    %3 = vector.shape_cast %2 : vector<1x136x256xf32> to vector<136x256xf32>
    %cst = arith.constant dense<0.000000e+00> : vector<32x256xf32>
    %4 = tpu.matmul %1, %3, %cst {dimension_numbers = #tpu.dot_dimension_numbers<[1], [0], [0], [1], [0, 0, 1, 1], [], []>} : vector<32x136xf32>, vector<136x256xf32>, vector<32x256xf32> -> vector<32x256xf32>
    %c0_5 = arith.constant 0 : index
    %c0_6 = arith.constant 0 : index
    %c0_7 = arith.constant 0 : index
    %5 = vector.load %arg3[%c0_5, %c0_6, %c0_7] : memref<1x32x256xf32, #tpu.memory_space<vmem>>, vector<1x32x256xf32>
    %6 = vector.shape_cast %5 : vector<1x32x256xf32> to vector<32x256xf32>
    %7 = vector.shape_cast %4 : vector<32x256xf32> to vector<1x32x256xf32>
    tpu.vector_store %arg3[%c0_5, %c0_6, %c0_7], %7 {strides = array<i32>} : memref<1x32x256xf32, #tpu.memory_space<vmem>>, vector<1x32x256xf32>,
    return
  }
  func.func @transform_0(%arg0: i32) -> (i32, i32, i32) {
    %c0_i32 = arith.constant 0 : i32
    %c0_i32_0 = arith.constant 0 : i32
    %c0_i32_1 = arith.constant 0 : i32
    return %arg0, %c0_i32, %c0_i32_0 : i32, i32, i32
  }
  func.func @transform_1(%arg0: i32) -> (i32, i32, i32) {
    %c0_i32 = arith.constant 0 : i32
    %c0_i32_0 = arith.constant 0 : i32
    %c0_i32_1 = arith.constant 0 : i32
    return %arg0, %c0_i32, %c0_i32_0 : i32, i32, i32
  }
  func.func @transform_2(%arg0: i32) -> (i32, i32, i32) {
    %c0_i32 = arith.constant 0 : i32
    %c0_i32_0 = arith.constant 0 : i32
    %c0_i32_1 = arith.constant 0 : i32
    return %arg0, %c0_i32, %c0_i32_0 : i32, i32, i32
  }
}

</mosaic_0001>

<bundles_post_ra>
// kernel: same_pad_conv_transpose_2d.1
= control target key start
LH: loop header
LB: loop body
LE: loop exit
PB: predicated region body
PF: predicated region fallthrough
CT: control target
= control target key end

     0   :  { %s464_s9 = smov 0   ;;  %s546_s0 = inlined_call_operand.vmem [shape: f32[2,32,136], index: 0, kind: input, shape index: {}]   ;;  %s547_s1 = inlined_call_operand.vmem [shape: f32[2,136,256], index: 1, kind: input, shape index: {}]   ;;  %s548_s2 = inlined_call_operand.vmem [shape: f32[2,32,256], index: 2, kind: output, shape index: {}]  }
   0x1 LB: > { %s410_s10 = sadd.s32 4294967295, %s447_s9   ;;  %p414_p0 = scmp.ge.s32.totalorder %s447_s9, 1  ;;  %s447_s9 = sphi %s464_s9, %s12_s9  }
   0x2   : > { %p122_p1 = scmp.lt.s32.totalorder %s447_s9, 3 }
   0x4   : > { %p123_p2 = pnand %p414_p0, %p122_p1 }
   0x5   : > { %p149_p3 = scmp.lt.s32.totalorder (!%p123_p2), %s410_s10, 1 }
   0x6   : > { %126 = sbr.rel (%p123_p2) target bundleno = 206 (0xce), region = 28 }
   0xb   : > { %s550_s10 = smov (!%p149_p3, %s410_s10), 1  ;;  %vm206_vm0 = vcmask 64512  }
   0xc   : > { %s432_s11 = smul.u32 272, %s550_s10  ;;  %s430_s15 = sshll.u32 %s550_s10, 6 }
   0xd   : > { %s494_s18 = scalar_lea.vmem %s546_s0, %s430_s15  ;;  %s163_s21 = scalar_lea.vmem %s548_s2, %s430_s15 }
   0xe   : > { %s478_s14 = scalar_lea.vmem %s547_s1, %s432_s11  ;;  %v165_v11 = vld [vmem:[%s494_s18 + $0x8] sm:$0xff]  ;;  %v167_v22 = vld [vmem:[%s494_s18 + $0x18] sm:$0xff]  ;;  %v164_v36 = vld [vmem:[%s494_s18] sm:$0xff] }
   0xf   : > { %v203_v0 = vld [vmem:[%s478_s14 + $0xf8] sm:$0xff]  ;;  %v201_v1 = vld [vmem:[%s478_s14 + $0xe8] sm:$0xff]  ;;  %v202_v2 = vld [vmem:[%s478_s14 + $0xf0] sm:$0xff] }
  0x10   : > { %277 = vmatpush.msra.mxu2 %v203_v0  ;;  %v200_v3 = vld [vmem:[%s478_s14 + $0xe0] sm:$0xff]  ;;  %v199_v4 = vld [vmem:[%s478_s14 + $0xd8] sm:$0xff]  ;;  %219 = vmatpush.msra.mxu0 %v202_v2  ;;  %v198_v5 = vld [vmem:[%s478_s14 + $0xd0] sm:$0xff] }
  0x11   : > { %v197_v6 = vld [vmem:[%s478_s14 + $0xc8] sm:$0xff]  ;;  %v196_v7 = vld [vmem:[%s478_s14 + $0xc0] sm:$0xff]  ;;  %v195_v8 = vld [vmem:[%s478_s14 + $0xb8] sm:$0xff] }
  0x12   : > { %278 = vmatpush.msra.mxu2 %v201_v1  ;;  %220 = vmatpush.msra.mxu0 %v200_v3  ;;  %v194_v9 = vld [vmem:[%s478_s14 + $0xb0] sm:$0xff]  ;;  %v193_v10 = vld [vmem:[%s478_s14 + $0xa8] sm:$0xff]  ;;  %v192_v12 = vld [vmem:[%s478_s14 + $0xa0] sm:$0xff] }
  0x13   : > { %v205_v13 = vld [vmem:[%s478_s14 + $0x108] sm:$0xff]  ;;  %v191_v14 = vld [vmem:[%s478_s14 + $0x98] sm:$0xff]  ;;  %v190_v15 = vld [vmem:[%s478_s14 + $0x90] sm:$0xff] }
  0x14   : > { %279 = vmatpush.msra.mxu2 %v199_v4  ;;  %221 = vmatpush.msra.mxu0 %v198_v5  ;;  %v204_v16 = vld [vmem:[%s478_s14 + $0x100] sm:$0xff]  ;;  %v189_v17 = vld [vmem:[%s478_s14 + $0x88] sm:$0xff]  ;;  %v187_v19 = vld [vmem:[%s478_s14 + $0x78] sm:$0xff] }
  0x15   : > { %321 = vmatpush.msra.mxu3 %v205_v13  ;;  %263 = vmatpush.msra.mxu1 %v204_v16  ;;  %v188_v18 = vld [vmem:[%s478_s14 + $0x80] sm:$0xff]  ;;  %v186_v20 = vld [vmem:[%s478_s14 + $0x70] sm:$0xff]  ;;  %v185_v21 = vld [vmem:[%s478_s14 + $0x68] sm:$0xff] }
  0x16   : > { %280 = vmatpush.msra.mxu2 %v197_v6  ;;  %222 = vmatpush.msra.mxu0 %v196_v7  ;;  %v184_v23 = vld [vmem:[%s478_s14 + $0x60] sm:$0xff]  ;;  %v183_v24 = vld [vmem:[%s478_s14 + $0x58] sm:$0xff]  ;;  %v182_v25 = vld [vmem:[%s478_s14 + $0x50] sm:$0xff] }
  0x17   : > { %424 = vmatmul.msk.f32.vlgmr.msra.gmra.mxu3 %vm206_vm0, %v165_v11  ;;  %420 = vmatmul.msk.f32.vlgmr.msra.gmra.mxu1 %vm206_vm0, %v165_v11  ;;  %v181_v26 = vld [vmem:[%s478_s14 + $0x48] sm:$0xff]  ;;  %v180_v27 = vld [vmem:[%s478_s14 + $0x40] sm:$0xff]  ;;  %v179_v28 = vld [vmem:[%s478_s14 + $0x38] sm:$0xff] }
  0x18   : > { %281 = vmatpush.msra.mxu2 %v195_v8  ;;  %223 = vmatpush.msra.mxu0 %v194_v9  ;;  %v178_v29 = vld [vmem:[%s478_s14 + $0x30] sm:$0xff]  ;;  %v177_v30 = vld [vmem:[%s478_s14 + $0x28] sm:$0xff]  ;;  %v176_v32 = vld [vmem:[%s478_s14 + $0x20] sm:$0xff] }
  0x19   : > { %v169_v31 = vld [vmem:[%s494_s18 + $0x28] sm:$0xff]  ;;  %v175_v33 = vld [vmem:[%s478_s14 + $0x18] sm:$0xff]  ;;  %v174_v34 = vld [vmem:[%s478_s14 + $0x10] sm:$0xff] }
  0x1a   : > { %282 = vmatpush.msra.mxu2 %v193_v10  ;;  %224 = vmatpush.msra.mxu0 %v192_v12  ;;  %v173_v35 = vld [vmem:[%s478_s14 + $0x8] sm:$0xff]  ;;  %v172_v37 = vld [vmem:[%s478_s14] sm:$0xff]  ;;  %v171_v38 = vld [vmem:[%s494_s18 + $0x38] sm:$0xff] }
  0x1b   : > { %v166_v39 = vld [vmem:[%s494_s18 + $0x10] sm:$0xff]  ;;  %v168_v40 = vld [vmem:[%s494_s18 + $0x20] sm:$0xff] }
  0x1c   : > { %283 = vmatpush.msra.mxu2 %v191_v14  ;;  %225 = vmatpush.msra.mxu0 %v190_v15  ;;  %v170_v41 = vld [vmem:[%s494_s18 + $0x30] sm:$0xff] }
  0x1e   : > { %284 = vmatpush.msra.mxu2 %v189_v17  ;;  %226 = vmatpush.msra.mxu0 %v188_v18 }
  0x1f   : > { %425 = vmatmul.msk.f32.gmra.mxu3 %vm206_vm0, %v167_v22  ;;  %421 = vmatmul.msk.f32.gmra.mxu1 %vm206_vm0, %v167_v22 }
  0x20   : > { %285 = vmatpush.msra.mxu2 %v187_v19  ;;  %227 = vmatpush.msra.mxu0 %v186_v20 }
  0x22   : > { %286 = vmatpush.msra.mxu2 %v185_v21  ;;  %228 = vmatpush.msra.mxu0 %v184_v23 }
  0x24   : > { %287 = vmatpush.msra.mxu2 %v183_v24  ;;  %229 = vmatpush.msra.mxu0 %v182_v25 }
  0x26   : > { %288 = vmatpush.msra.mxu2 %v181_v26  ;;  %230 = vmatpush.msra.mxu0 %v180_v27 }
  0x27   : > { %426 = vmatmul.msk.f32.gmra.mxu3 %vm206_vm0, %v169_v31  ;;  %422 = vmatmul.msk.f32.gmra.mxu1 %vm206_vm0, %v169_v31 }
  0x28   : > { %289 = vmatpush.msra.mxu2 %v179_v28  ;;  %231 = vmatpush.msra.mxu0 %v178_v29 }
  0x2a   : > { %290 = vmatpush.msra.mxu2 %v177_v30  ;;  %232 = vmatpush.msra.mxu0 %v176_v32 }
  0x2c   : > { %291 = vmatpush.msra.mxu2 %v175_v33  ;;  %233 = vmatpush.msra.mxu0 %v174_v34 }
  0x2e   : > { %292 = vmatpush.msra.mxu2 %v173_v35  ;;  %234 = vmatpush.msra.mxu0 %v172_v37 }
  0x2f   : > { %293 = vmatmul.f32.vlgmr.msra.gmra.mxu2 %v164_v36  ;;  %235 = vmatmul.f32.vlgmr.msra.gmra.mxu0 %v164_v36 }
  0x30   : > { %427 = vmatmul.msk.f32.gmra.mxu3 %vm206_vm0, %v171_v38  ;;  %423 = vmatmul.msk.f32.gmra.mxu1 %vm206_vm0, %v171_v38 }
  0x37   : > { %296 = vmatmul.f32.gmra.mxu2 %v166_v39  ;;  %238 = vmatmul.f32.gmra.mxu0 %v166_v39 }
  0x3f   : > { %299 = vmatmul.f32.gmra.mxu2 %v168_v40  ;;  %241 = vmatmul.f32.gmra.mxu0 %v168_v40 }
  0x47   : > { %302 = vmatmul.f32.gmra.mxu2 %v170_v41  ;;  %244 = vmatmul.f32.gmra.mxu0 %v170_v41 }
  0x94   : > { %v265_v42 = vpop.f32.mrf.mxu1 }
  0x9a   : > { %v323_v43 = vpop.f32.mrf.mxu3 }
  0x9c   : > { %v268_v46 = vpop.f32.mrf.mxu1 }
  0xa2   : > { %v326_v49 = vpop.f32.mrf.mxu3 }
  0xa4   : > { %v271_v52 = vpop.f32.mrf.mxu1 }
  0xaa   : > { %v329_v57 = vpop.f32.mrf.mxu3 }
  0xac   : > { %v236_v44 = vpop.f32.mrf.mxu0 }
  0xad   : > { %v266_v45 = vadd.f32 %v265_v42, %v236_v44  ;;  %v274_v60 = vpop.f32.mrf.mxu1 }
  0xaf   : > { %335 = vst [vmem:[%s163_s21] sm:$0xff] %v266_v45 }
  0xb2   : > { %v294_v47 = vpop.f32.mrf.mxu2 }
  0xb3   : > { %v324_v48 = vadd.f32 %v323_v43, %v294_v47  ;;  %v332_v63 = vpop.f32.mrf.mxu3 }
  0xb4   : > { %v239_v50 = vpop.f32.mrf.mxu0 }
  0xb5   : > { %336 = vst [vmem:[%s163_s21 + $0x8] sm:$0xff] %v324_v48  ;;  %v269_v51 = vadd.f32 %v268_v46, %v239_v50 }
  0xb7   : > { %337 = vst [vmem:[%s163_s21 + $0x10] sm:$0xff] %v269_v51 }
  0xba   : > { %v297_v53 = vpop.f32.mrf.mxu2 }
  0xbb   : > { %v327_v54 = vadd.f32 %v326_v49, %v297_v53 }
  0xbc   : > { %v242_v55 = vpop.f32.mrf.mxu0 }
  0xbd   : > { %338 = vst [vmem:[%s163_s21 + $0x18] sm:$0xff] %v327_v54  ;;  %v272_v56 = vadd.f32 %v271_v52, %v242_v55 }
  0xbf   : > { %339 = vst [vmem:[%s163_s21 + $0x20] sm:$0xff] %v272_v56 }
  0xc2   : > { %v300_v58 = vpop.f32.mrf.mxu2 }
  0xc3   : > { %v330_v59 = vadd.f32 %v329_v57, %v300_v58 }
  0xc4   : > { %v245_v61 = vpop.f32.mrf.mxu0 }
  0xc5   : > { %340 = vst [vmem:[%s163_s21 + $0x28] sm:$0xff] %v330_v59  ;;  %v275_v62 = vadd.f32 %v274_v60, %v245_v61 }
  0xc7   : > { %341 = vst [vmem:[%s163_s21 + $0x30] sm:$0xff] %v275_v62 }
  0xca   : > { %v303_v0 = vpop.f32.mrf.mxu2 }
  0xcb   : > { %v333_v1 = vadd.f32 %v332_v63, %v303_v0 }
  0xcd   : > { %342 = vst [vmem:[%s163_s21 + $0x38] sm:$0xff] %v333_v1 }
  0xce PF: > { %s12_s9 = sadd.s32 1, %s447_s9  }
  0xcf   : > { %p9_p4 = scmp.ge.s32.totalorder %s12_s9, 4  }
  0xd1   :  { %11 = sbr.rel (!%p9_p4) target bundleno = 1 (0x1), region = 61 }

</bundles_post_ra>
